<compile_context>
chip_gen: v7x
topology: tpu7x:2x2x1
jax: 0.10.0
libtpu: 0.0.40
codegen_flags: <defaults>
</compile_context>

<pallas_src>
import functools

import jax
import jax.numpy as jnp
from jax.experimental import pallas as pl
from jax.experimental.pallas import tpu as pltpu


def _round_up(x: int, m: int) -> int:
    return ((x + m - 1) // m) * m


def _sgc_kernel(a_ref, x_ref, w_ref, b_ref, o_ref, h_ref, acc_ref, *,
                K: int, TM: int, TK: int, pre_transform: bool):
    """Fused SGC forward.

    a_ref : (TM, TK)        bf16 tile of A_hat
    x_ref : (N, F_in)       bf16, resident (constant block index)
    w_ref : (F_in, F_out)   bf16 (W^T), resident
    b_ref : (1, F_out)      f32, resident
    o_ref : (TM, F_out)     f32 output tile
    h_ref : (2, N, F_h)     bf16 scratch, ping-pong propagation state
    acc_ref: (TM, F_h)      f32 accumulator over the reduction (j) axis
    """
    k = pl.program_id(0)        # propagation step
    i = pl.program_id(1)        # row tile
    j = pl.program_id(2)        # reduction (column) tile
    nj = pl.num_programs(2)

    # One-time init of the propagation state (first grid step only).
    @pl.when((k == 0) & (i == 0) & (j == 0))
    def _init_h():
        if pre_transform:
            # H0 = X @ W^T  (bias added at the very end -> exact reassociation)
            h0 = jnp.dot(x_ref[...], w_ref[...],
                         preferred_element_type=jnp.float32)
            h_ref[0] = h0.astype(h_ref.dtype)
        else:
            h_ref[0] = x_ref[...].astype(h_ref.dtype)

    # Zero the accumulator at the start of each reduction.
    @pl.when(j == 0)
    def _zero_acc():
        acc_ref[...] = jnp.zeros_like(acc_ref)

    slot = jax.lax.rem(k, 2)
    col0 = pl.multiple_of(j * TK, TK)
    h_blk = h_ref.at[slot][pl.ds(col0, TK), :]        # (TK, F_h) bf16
    acc_ref[...] += jnp.dot(a_ref[...], h_blk,
                            preferred_element_type=jnp.float32)

    # End of the reduction for this row tile.
    @pl.when(j == nj - 1)
    def _finish_row_tile():
        acc = acc_ref[...]
        row0 = pl.multiple_of(i * TM, TM)

        # Stage the freshly propagated rows for the next step (bf16).
        @pl.when(k + 1 < K)
        def _stage_next():
            h_ref.at[1 - slot][pl.ds(row0, TM), :] = acc.astype(h_ref.dtype)

        # Epilogue: only the final propagation step produces the output.
        @pl.when(k == K - 1)
        def _write_out():
            if pre_transform:
                out = acc + b_ref[...]
            else:
                out = jnp.dot(acc.astype(w_ref.dtype), w_ref[...],
                              preferred_element_type=jnp.float32) + b_ref[...]
            o_ref[...] = out.astype(o_ref.dtype)


def sgc_forward_pallas(a_hat, x, weight, bias, *, K: int = 2):
    """a_hat: (N, N) f32, x: (N, F_in) f32, weight: (F_out, F_in), bias: (F_out,)."""
    assert K >= 1, "SGC propagation steps K must be >= 1"
    N, F_in = x.shape
    F_out = weight.shape[0]

    # Lane-dense feature padding (unmasked stores, full MXU columns).
    F_in_p = _round_up(max(F_in, 1), 128)
    F_out_p = _round_up(max(F_out, 1), 128)

    # A_hat tile edges: 512 for big graphs (~85% HBM roofline), otherwise whole
    # (128-rounded) graph in one tile.  Always a multiple of 128.
    TILE = 512
    if N <= TILE:
        N_p = _round_up(N, 128)
        TM = TK = N_p
    else:
        N_p = _round_up(N, TILE)
        TM = TK = TILE

    pre_transform = F_out_p <= F_in_p           # propagate on the narrower width
    F_h = F_out_p if pre_transform else F_in_p

    # Pad + cast operands: bf16 MXU inputs, f32 bias / accumulation.
    a_p = jnp.zeros((N_p, N_p), jnp.bfloat16).at[:N, :N].set(
        a_hat.astype(jnp.bfloat16))
    x_p = jnp.zeros((N_p, F_in_p), jnp.bfloat16).at[:N, :F_in].set(
        x.astype(jnp.bfloat16))
    w_p = jnp.zeros((F_in_p, F_out_p), jnp.bfloat16).at[:F_in, :F_out].set(
        weight.T.astype(jnp.bfloat16))
    b_p = jnp.zeros((1, F_out_p), jnp.float32).at[0, :F_out].set(
        bias.astype(jnp.float32))

    grid = (K, N_p // TM, N_p // TK)

    flops = 2 * K * N_p * N_p * F_h + 2 * N_p * F_in_p * F_out_p
    bytes_accessed = (K * N_p * N_p * 2                      # A_hat streamed K times (bf16)
                      + N_p * F_in_p * 2                     # X
                      + F_in_p * F_out_p * 2 + F_out_p * 4   # W^T, bias
                      + K * N_p * F_out_p * 4)               # output writebacks
    cost = pl.CostEstimate(flops=flops, transcendentals=0,
                           bytes_accessed=bytes_accessed)

    kernel = functools.partial(_sgc_kernel, K=K, TM=TM, TK=TK,
                               pre_transform=pre_transform)

    # TODO(synk): X and the propagation state H are kept fully VMEM-resident
    # (fine for typical SGC feature widths); very large N would need H tiling too.
    out_p = pl.pallas_call(
        kernel,
        out_shape=jax.ShapeDtypeStruct((N_p, F_out_p), jnp.float32),
        grid=grid,
        in_specs=[
            pl.BlockSpec((TM, TK), lambda k, i, j: (i, j)),          # A_hat tile
            pl.BlockSpec((N_p, F_in_p), lambda k, i, j: (0, 0)),     # X (resident)
            pl.BlockSpec((F_in_p, F_out_p), lambda k, i, j: (0, 0)),  # W^T (resident)
            pl.BlockSpec((1, F_out_p), lambda k, i, j: (0, 0)),      # bias (resident)
        ],
        out_specs=pl.BlockSpec((TM, F_out_p), lambda k, i, j: (i, 0)),
        scratch_shapes=[
            pltpu.VMEM((2, N_p, F_h), jnp.bfloat16),   # ping-pong H state
            pltpu.VMEM((TM, F_h), jnp.float32),        # f32 accumulator
        ],
        compiler_params=pltpu.CompilerParams(
            dimension_semantics=("arbitrary", "arbitrary", "arbitrary")),
        cost_estimate=cost,
    )(a_p, x_p, w_p, b_p)

    return out_p[:N, :F_out].astype(x.dtype)


def build_gcn_norm_adj(edge_index, edge_weight, num_nodes):
    """Dense GCN-normalized adjacency, PyG gcn_norm / add_remaining_self_loops
    semantics: unit self loops are only added to nodes WITHOUT an existing one."""
    src, dst = edge_index[0], edge_index[1]
    if edge_weight is None:
        edge_weight = jnp.ones(src.shape[0], dtype=jnp.float32)
    adj = jnp.zeros((num_nodes, num_nodes), dtype=jnp.float32)
    adj = adj.at[dst, src].add(edge_weight)          # A[i, j]: message j -> i
    has_self = jnp.zeros((num_nodes,), jnp.float32).at[src].add(
        jnp.where(src == dst, 1.0, 0.0)) > 0
    adj = adj + jnp.diag(jnp.where(has_self, 0.0, 1.0))
    deg = adj.sum(axis=1)
    dinv = jnp.where(deg > 0, jax.lax.rsqrt(deg), 0.0)
    return dinv[:, None] * adj * dinv[None, :]


def sgc_reference_f32(a_hat, x, weight, bias, *, K: int = 2):
    h = x
    for _ in range(K):
        h = a_hat @ h
    return h @ weight.T + bias


def sgc_reference_bf16(a_hat, x, weight, bias, *, K: int = 2):
    """Mirrors the kernel's numerics: bf16 operands, f32 accumulate, bf16-staged H,
    pre-transformed linear (F_out < F_in path), bias added last in f32."""
    f32 = jnp.float32
    a = a_hat.astype(jnp.bfloat16).astype(f32)
    h = jnp.dot(x.astype(jnp.bfloat16).astype(f32),
                weight.T.astype(jnp.bfloat16).astype(f32))
    h = h.astype(jnp.bfloat16).astype(f32)
    for step in range(K):
        h = jnp.dot(a, h)
        if step < K - 1:
            h = h.astype(jnp.bfloat16).astype(f32)
    return h + bias.astype(f32)


if __name__ == "__main__":
    key = jax.random.PRNGKey(0)
    k_x, k_e, k_w, k_b = jax.random.split(key, 4)

    N = 32       # nodes
    F_in = 16    # in_channels
    F_out = 8    # out_channels
    E = 96       # edges
    K = 2        # propagation steps (SGC default)

    x = jax.random.normal(k_x, (N, F_in), dtype=jnp.float32)
    edge_index = jax.random.randint(k_e, (2, E), 0, N, dtype=jnp.int32)
    edge_weight = None  # defaults to ones

    # Deterministic SGConv.lin parameters (nn.Linear(F_in, F_out, bias=True)).
    bound = 1.0 / jnp.sqrt(jnp.float32(F_in))
    weight = jax.random.uniform(k_w, (F_out, F_in), jnp.float32, -bound, bound)
    bias = jax.random.uniform(k_b, (F_out,), jnp.float32, -bound, bound)

    a_hat = build_gcn_norm_adj(edge_index, edge_weight, N)

    out = jax.block_until_ready(sgc_forward_pallas(a_hat, x, weight, bias, K=K))

    ref_q = sgc_reference_bf16(a_hat, x, weight, bias, K=K)   # kernel-matched numerics
    ref_f = sgc_reference_f32(a_hat, x, weight, bias, K=K)    # pure f32 sanity check

    assert out.shape == (N, F_out)
    assert jnp.allclose(out, ref_q, atol=1e-3, rtol=1e-3), float(
        jnp.abs(out - ref_q).max())
    assert jnp.allclose(out, ref_f, atol=5e-2, rtol=5e-2), float(
        jnp.abs(out - ref_f).max())

    print("KERNEL_OK")
</pallas_src>

<mosaic_0001>
module attributes {stable_mosaic.version = 11 : i64} {
  func.func @_sgc_kernel(%arg0: i32, %arg1: i32, %arg2: i32, %arg3: memref<128x128xbf16, #tpu.memory_space<vmem>>, %arg4: memref<128x128xbf16, #tpu.memory_space<vmem>>, %arg5: memref<128x128xbf16, #tpu.memory_space<vmem>>, %arg6: memref<1x128xf32, #tpu.memory_space<vmem>>, %arg7: memref<128x128xf32, #tpu.memory_space<vmem>>, %arg8: memref<2x128x128xbf16, #tpu.memory_space<vmem>>, %arg9: memref<128x128xf32, #tpu.memory_space<vmem>>) attributes {dimension_semantics = [#tpu.dimension_semantics<arbitrary>, #tpu.dimension_semantics<arbitrary>, #tpu.dimension_semantics<arbitrary>], iteration_bounds = array<i64: 2, 1, 1>, scalar_prefetch = 0 : i64, scratch_operands = 2 : i64, tpu.core_type = #tpu.core_type<tc>, window_params = [{transform_indices = @transform_0, window_bounds = array<i64: 128, 128>}, {pipeline_mode = #tpu.pipeline_mode<synchronous>, transform_indices = @transform_1, window_bounds = array<i64: 128, 128>}, {pipeline_mode = #tpu.pipeline_mode<synchronous>, transform_indices = @transform_2, window_bounds = array<i64: 128, 128>}, {pipeline_mode = #tpu.pipeline_mode<synchronous>, transform_indices = @transform_3, window_bounds = array<i64: 1, 128>}, {transform_indices = @transform_4, window_bounds = array<i64: 128, 128>}]} {
    %c0_i32 = arith.constant 0 : i32
    %0 = arith.cmpi eq, %arg0, %c0_i32 : i32
    %c0_i32_0 = arith.constant 0 : i32
    %1 = arith.cmpi eq, %arg1, %c0_i32_0 : i32
    %2 = arith.andi %0, %1 : i1
    %c0_i32_1 = arith.constant 0 : i32
    %3 = arith.cmpi eq, %arg2, %c0_i32_1 : i32
    %4 = arith.andi %2, %3 : i1
    %5 = arith.extui %4 : i1 to i32
    %c0_i32_2 = arith.constant 0 : i32
    %6 = arith.cmpi ne, %5, %c0_i32_2 : i32
    scf.if %6 {
      %c0_15 = arith.constant 0 : index
      %c0_16 = arith.constant 0 : index
      %25 = vector.load %arg4[%c0_15, %c0_16] : memref<128x128xbf16, #tpu.memory_space<vmem>>, vector<128x128xbf16>
      %c0_17 = arith.constant 0 : index
      %c0_18 = arith.constant 0 : index
      %26 = vector.load %arg5[%c0_17, %c0_18] : memref<128x128xbf16, #tpu.memory_space<vmem>>, vector<128x128xbf16>
      %cst_19 = arith.constant dense<0.000000e+00> : vector<128x128xf32>
      %27 = tpu.matmul %25, %26, %cst_19 {dimension_numbers = #tpu.dot_dimension_numbers<[1], [0], [0], [1], [0, 0, 1, 1], [], []>} : vector<128x128xbf16>, vector<128x128xbf16>, vector<128x128xf32> -> vector<128x128xf32>
      %28 = arith.truncf %27 : vector<128x128xf32> to vector<128x128xbf16>
      %c0_20 = arith.constant 0 : index
      %c0_21 = arith.constant 0 : index
      %c0_22 = arith.constant 0 : index
      %29 = vector.load %arg8[%c0_20, %c0_21, %c0_22] : memref<2x128x128xbf16, #tpu.memory_space<vmem>>, vector<1x128x128xbf16>
      %30 = vector.shape_cast %29 : vector<1x128x128xbf16> to vector<128x128xbf16>
      %31 = vector.shape_cast %28 : vector<128x128xbf16> to vector<1x128x128xbf16>
      tpu.vector_store %arg8[%c0_20, %c0_21, %c0_22], %31 {strides = array<i32>} : memref<2x128x128xbf16, #tpu.memory_space<vmem>>, vector<1x128x128xbf16>,
    } else {
    }
    %c0_i32_3 = arith.constant 0 : i32
    %7 = arith.cmpi eq, %arg2, %c0_i32_3 : i32
    %8 = arith.extui %7 : i1 to i32
    %c0_i32_4 = arith.constant 0 : i32
    %9 = arith.cmpi ne, %8, %c0_i32_4 : i32
    scf.if %9 {
      %cst_15 = arith.constant 0.000000e+00 : f32
      %25 = vector.broadcast %cst_15 : f32 to vector<128x128xf32>
      %c0_16 = arith.constant 0 : index
      %c0_17 = arith.constant 0 : index
      %26 = vector.load %arg9[%c0_16, %c0_17] : memref<128x128xf32, #tpu.memory_space<vmem>>, vector<128x128xf32>
      tpu.vector_store %arg9[%c0_16, %c0_17], %25 {strides = array<i32>} : memref<128x128xf32, #tpu.memory_space<vmem>>, vector<128x128xf32>,
    } else {
    }
    %c2_i32 = arith.constant 2 : i32
    %10 = arith.remsi %arg0, %c2_i32 : i32
    %c128_i32 = arith.constant 128 : i32
    %11 = arith.muli %arg2, %c128_i32 : i32
    %12 = tpu.assume_multiple %11, 128 : i32
    %c0_i32_5 = arith.constant 0 : i32
    %c0_i32_6 = arith.constant 0 : i32
    %13 = tpu.memref_slice %arg8[%10, %c0_i32_5, %c0_i32_6] : memref<2x128x128xbf16, #tpu.memory_space<vmem>> -> memref<1x128x128xbf16, #tpu.memory_space<vmem>>
    %14 = tpu.memref_squeeze %13 : memref<1x128x128xbf16, #tpu.memory_space<vmem>> -> memref<128x128xbf16, #tpu.memory_space<vmem>>
    %15 = arith.index_cast %12 : i32 to index
    %c0 = arith.constant 0 : index
    %16 = vector.load %14[%15, %c0] : memref<128x128xbf16, #tpu.memory_space<vmem>>, vector<128x128xbf16>
    %c0_7 = arith.constant 0 : index
    %c0_8 = arith.constant 0 : index
    %17 = vector.load %arg9[%c0_7, %c0_8] : memref<128x128xf32, #tpu.memory_space<vmem>>, vector<128x128xf32>
    %c0_9 = arith.constant 0 : index
    %c0_10 = arith.constant 0 : index
    %18 = vector.load %arg3[%c0_9, %c0_10] : memref<128x128xbf16, #tpu.memory_space<vmem>>, vector<128x128xbf16>
    %cst = arith.constant dense<0.000000e+00> : vector<128x128xf32>
    %19 = tpu.matmul %18, %16, %cst {dimension_numbers = #tpu.dot_dimension_numbers<[1], [0], [0], [1], [0, 0, 1, 1], [], []>} : vector<128x128xbf16>, vector<128x128xbf16>, vector<128x128xf32> -> vector<128x128xf32>
    %20 = arith.addf %17, %19 : vector<128x128xf32>
    %c0_11 = arith.constant 0 : index
    %c0_12 = arith.constant 0 : index
    %21 = vector.load %arg9[%c0_11, %c0_12] : memref<128x128xf32, #tpu.memory_space<vmem>>, vector<128x128xf32>
    tpu.vector_store %arg9[%c0_11, %c0_12], %20 {strides = array<i32>} : memref<128x128xf32, #tpu.memory_space<vmem>>, vector<128x128xf32>,
    %c0_i32_13 = arith.constant 0 : i32
    %22 = arith.cmpi eq, %arg2, %c0_i32_13 : i32
    %23 = arith.extui %22 : i1 to i32
    %c0_i32_14 = arith.constant 0 : i32
    %24 = arith.cmpi ne, %23, %c0_i32_14 : i32
    scf.if %24 {
      %c0_15 = arith.constant 0 : index
      %c0_16 = arith.constant 0 : index
      %25 = vector.load %arg9[%c0_15, %c0_16] : memref<128x128xf32, #tpu.memory_space<vmem>>, vector<128x128xf32>
      %c128_i32_17 = arith.constant 128 : i32
      %26 = arith.muli %arg1, %c128_i32_17 : i32
      %27 = tpu.assume_multiple %26, 128 : i32
      %c1_i32 = arith.constant 1 : i32
      %28 = arith.addi %arg0, %c1_i32 : i32
      %c2_i32_18 = arith.constant 2 : i32
      %29 = arith.cmpi slt, %28, %c2_i32_18 : i32
      %30 = arith.extui %29 : i1 to i32
      %c0_i32_19 = arith.constant 0 : i32
      %31 = arith.cmpi ne, %30, %c0_i32_19 : i32
      scf.if %31 {
        %35 = arith.truncf %25 : vector<128x128xf32> to vector<128x128xbf16>
        %c1_i32_22 = arith.constant 1 : i32
        %36 = arith.subi %c1_i32_22, %10 : i32
        %c0_i32_23 = arith.constant 0 : i32
        %c0_i32_24 = arith.constant 0 : i32
        %37 = tpu.memref_slice %arg8[%36, %c0_i32_23, %c0_i32_24] : memref<2x128x128xbf16, #tpu.memory_space<vmem>> -> memref<1x128x128xbf16, #tpu.memory_space<vmem>>
        %38 = tpu.memref_squeeze %37 : memref<1x128x128xbf16, #tpu.memory_space<vmem>> -> memref<128x128xbf16, #tpu.memory_space<vmem>>
        %39 = arith.index_cast %27 : i32 to index
        %c0_25 = arith.constant 0 : index
        %40 = vector.load %38[%39, %c0_25] : memref<128x128xbf16, #tpu.memory_space<vmem>>, vector<128x128xbf16>
        tpu.vector_store %38[%39, %c0_25], %35 {strides = array<i32>} : memref<128x128xbf16, #tpu.memory_space<vmem>>, vector<128x128xbf16>,
      } else {
      }
      %c1_i32_20 = arith.constant 1 : i32
      %32 = arith.cmpi eq, %arg0, %c1_i32_20 : i32
      %33 = arith.extui %32 : i1 to i32
      %c0_i32_21 = arith.constant 0 : i32
      %34 = arith.cmpi ne, %33, %c0_i32_21 : i32
      scf.if %34 {
        %c0_22 = arith.constant 0 : index
        %c0_23 = arith.constant 0 : index
        %35 = vector.load %arg6[%c0_22, %c0_23] : memref<1x128xf32, #tpu.memory_space<vmem>>, vector<1x128xf32>
        %36 = vector.broadcast %35 : vector<1x128xf32> to vector<128x128xf32>
        %37 = arith.addf %25, %36 : vector<128x128xf32>
        %c0_24 = arith.constant 0 : index
        %c0_25 = arith.constant 0 : index
        %38 = vector.load %arg7[%c0_24, %c0_25] : memref<128x128xf32, #tpu.memory_space<vmem>>, vector<128x128xf32>
        tpu.vector_store %arg7[%c0_24, %c0_25], %37 {strides = array<i32>} : memref<128x128xf32, #tpu.memory_space<vmem>>, vector<128x128xf32>,
      } else {
      }
    } else {
    }
    return
  }
  func.func @transform_0(%arg0: i32, %arg1: i32, %arg2: i32) -> (i32, i32) {
    %c0_i32 = arith.constant 0 : i32
    return %arg1, %arg2 : i32, i32
  }
  func.func @transform_1(%arg0: i32, %arg1: i32, %arg2: i32) -> (i32, i32) {
    %c0_i32 = arith.constant 0 : i32
    %c0_i32_0 = arith.constant 0 : i32
    %c0_i32_1 = arith.constant 0 : i32
    return %c0_i32, %c0_i32_0 : i32, i32
  }
  func.func @transform_2(%arg0: i32, %arg1: i32, %arg2: i32) -> (i32, i32) {
    %c0_i32 = arith.constant 0 : i32
    %c0_i32_0 = arith.constant 0 : i32
    %c0_i32_1 = arith.constant 0 : i32
    return %c0_i32, %c0_i32_0 : i32, i32
  }
  func.func @transform_3(%arg0: i32, %arg1: i32, %arg2: i32) -> (i32, i32) {
    %c0_i32 = arith.constant 0 : i32
    %c0_i32_0 = arith.constant 0 : i32
    %c0_i32_1 = arith.constant 0 : i32
    return %c0_i32, %c0_i32_0 : i32, i32
  }
  func.func @transform_4(%arg0: i32, %arg1: i32, %arg2: i32) -> (i32, i32) {
    %c0_i32 = arith.constant 0 : i32
    %c0_i32_0 = arith.constant 0 : i32
    return %arg1, %c0_i32 : i32, i32
  }
}

</mosaic_0001>

<bundles_post_ra>
// kernel: tpu_custom_call.1
= control target key start
LH: loop header
LB: loop body
LE: loop exit
PB: predicated region body
PF: predicated region fallthrough
CT: control target
= control target key end

     0   :  { %9 = vsyncpa [#allocation5], 0  ;;  %s1573_s0 = inlined_call_operand.hbm [shape: bf16[128,128], index: 0, kind: input, shape index: {}]   ;;  %s1574_s1 = inlined_call_operand.hbm [shape: bf16[128,128], index: 1, kind: input, shape index: {}]   ;;  %s1575_s2 = inlined_call_operand.hbm [shape: bf16[128,128], index: 2, kind: input, shape index: {}]   ;;  %s1576_s3 = inlined_call_operand.vmem [shape: f32[1,128], index: 3, kind: input, shape index: {}]   ;;  %s1577_s4 = inlined_call_operand.hbm [shape: f32[128,128], index: 4, kind: output, shape index: {}]  }
   0x1   :  { %10 = vsyncpa [#allocation8], 0 }
   0x2   :  { %11 = vsyncpa [#allocation6], 0  ;;  %s1382_s15 = smov 0   ;;  %s1384_s16 = smov 0  }
   0x3   :  { %s1386_s17 = smov 0  }
   0x4 LB: > { %s934_s18 = sadd.s32 4294967295, %s1347_s17   ;;  %p935_p0 = scmp.ge.s32.totalorder %s1347_s17, 1  ;;  %s1347_s17 = sphi %s1386_s17, %s17_s17   ;;  %s1343_s16 = sphi %s1384_s16, %s1590_s16   ;;  %s1339_s15 = sphi %s1382_s15, %s1589_s15  }
   0x5   : > { %p158_p1 = scmp.lt.s32.totalorder %s1347_s17, 3  ;;  %p1402_p2 = scmp.eq.s32.totalorder %s934_s18, 0 }
   0x6   : > { %s1349_s21 = smov [#allocation7]   ;;  %s36_s24 = sadd.s32 1, %s1343_s16 }
   0x7   : > { %s1581_s19 = scalar_select %p1402_p2, 1, 0 }
   0x8   : > { %p1406_p3 = pnand %p935_p0, %p158_p1  ;;  %s187_s22 = sshll.u32 %s1349_s21, 4  ;;  %s1410_s22 = int_to_ptr.vmem [resolvable:$true] %s187_s22 }
   0x9   : > { %p1421_p6 = scmp.ge.s32.totalorder %s36_s24, 2  ;;  %s1350_s26 = smov [#allocation4]  }
   0xa   : > { %s1582_s20 = scalar_select %p1406_p3, 1, 0 }
   0xb   : > { %p1129_p4 = pneg %p1406_p3  ;;  %s174_s27 = sshll.u32 %s1350_s26, 4  ;;  %s175_s27 = int_to_ptr.vmem [resolvable:$true] %s174_s27 }
   0xc   : > { %s1203_s30 = scalar_lea.hbm %s1574_s1, 1024 }
   0xd   : > { %p1416_p5 = pnand %p1402_p2, %p1129_p4  ;;  %p1204_p7 = scmp.ne.s32.totalorder %s1574_s1, %s1203_s30 }
   0xe   : > { %p1210_p11 = scmp.lt.u32.totalorder %s1203_s30, %s1574_s1 }
   0xf   : > { %p1433_p8 = pneg %p1416_p5 }
  0x11   : > { %p1206_p9 = pnand %p1433_p8, %p1204_p7 }
  0x13   : > { %p1207_p10 = pneg %p1206_p9 }
  0x15   : > { %p1212_p12 = pnand %p1210_p11, %p1207_p10 }
  0x17   : > { %1215 = shalt.err (!%p1212_p12)
}
  0x18   : > { %s1216_s10 = scalar_lea.vmem %s1410_s22, 1024  ;;  %p1224_p4 = scmp.lt.s32.totalorder %s1410_s22, %s1410_s22 }
  0x19   : > { %p1217_p13 = scmp.ne.s32.totalorder %s1410_s22, %s1216_s10  ;;  %p1225_p2 = scmp.lt.s32.totalorder %s1216_s10, %s1216_s10 }
  0x1b   : > { %p1219_p0 = pnand %p1217_p13, %p1433_p8  ;;  %p1226_p7 = por %p1225_p2, %p1224_p4 }
  0x1d   : > { %p1220_p1 = pneg %p1219_p0 }
  0x1f   : > { %p1227_p9 = pnand %p1226_p7, %p1220_p1 }
  0x21   : > { %1230 = shalt.err (!%p1227_p9)
}
  0x22   : > { %s1351_s11 = smov 64   ;;  %s1352_s12 = smov 4  }
  0x23   : > { %1135 = dma.hbm_to_vmem [thread:$0]  (!%p1416_p5), %s1574_s1, 1024, %s1410_s22, [#allocation8], %s1351_s11, %s1351_s11, %s1352_s12  }
  0x24   : > { %s1592_s24 = smov (%p1421_p6, %s36_s24), 0  ;;  %s1231_s28 = scalar_lea.hbm %s1573_s0, 1024 }
  0x25   : > { %p1232_p2 = scmp.ne.s32.totalorder %s1573_s0, %s1231_s28  ;;  %p1238_p12 = scmp.lt.u32.totalorder %s1231_s28, %s1573_s0 }
  0x27   : > { %p1234_p10 = pnand %p1232_p2, %p1433_p8 }
  0x29   : > { %p1235_p11 = pneg %p1234_p10 }
  0x2b   : > { %p1240_p13 = pnand %p1238_p12, %p1235_p11 }
  0x2d   : > { %1243 = shalt.err (!%p1240_p13)
}
  0x2e   : > { %s1244_s22 = scalar_lea.vmem %s175_s27, 1024  ;;  %p1252_p4 = scmp.lt.s32.totalorder %s175_s27, %s175_s27 }
  0x2f   : > { %p1245_p6 = scmp.ne.s32.totalorder %s175_s27, %s1244_s22  ;;  %p1253_p7 = scmp.lt.s32.totalorder %s1244_s22, %s1244_s22 }
  0x31   : > { %p1247_p0 = pnand %p1245_p6, %p1433_p8  ;;  %p1254_p9 = por %p1253_p7, %p1252_p4 }
  0x33   : > { %p1248_p1 = pneg %p1247_p0 }
  0x35   : > { %p1255_p3 = pnand %p1254_p9, %p1248_p1 }
  0x37   : > { %1258 = shalt.err (!%p1255_p3)
}
  0x38   : > { %1132 = dma.hbm_to_vmem [thread:$0]  (!%p1416_p5), %s1573_s0, 1024, %s175_s27, [#allocation5], %s1351_s11, %s1351_s11, %s1352_s12  }
  0x39   : > { %s1353_s9 = smov [#allocation9]   ;;  %s1259_s21 = scalar_lea.hbm %s1575_s2, 1024 }
  0x3a   : > { %s200_s10 = sshll.u32 %s1353_s9, 4  ;;  %p1260_p3 = scmp.ne.s32.totalorder %s1575_s2, %s1259_s21  ;;  %s201_s10 = int_to_ptr.vmem [resolvable:$true] %s200_s10 }
  0x3b   : > { %p1266_p11 = scmp.lt.u32.totalorder %s1259_s21, %s1575_s2 }
  0x3c   : > { %p1262_p2 = pnand %p1260_p3, %p1433_p8 }
  0x3e   : > { %p1263_p10 = pneg %p1262_p2 }
  0x40   : > { %p1268_p12 = pnand %p1266_p11, %p1263_p10 }
  0x42   : > { %1271 = shalt.err (!%p1268_p12)
}
  0x43   : > { %s1272_s27 = scalar_lea.vmem %s201_s10, 1024  ;;  %p1280_p1 = scmp.lt.s32.totalorder %s201_s10, %s201_s10 }
  0x44   : > { %p1273_p13 = scmp.ne.s32.totalorder %s201_s10, %s1272_s27  ;;  %p1281_p4 = scmp.lt.s32.totalorder %s1272_s27, %s1272_s27 }
  0x46   : > { %p1275_p6 = pnand %p1273_p13, %p1433_p8  ;;  %p1282_p7 = por %p1281_p4, %p1280_p1 }
  0x48   : > { %p1276_p0 = pneg %p1275_p6 }
  0x4a   : > { %p1283_p9 = pnand %p1282_p7, %p1276_p0 }
  0x4c   : > { %1286 = shalt.err (!%p1283_p9)
}
  0x4d   : > { %1138 = dma.hbm_to_vmem [thread:$0]  (!%p1416_p5), %s1575_s2, 1024, %s201_s10, [#allocation8], %s1351_s11, %s1351_s11, %s1352_s12  }
  0x4e   : > { %p1586_p3 = scmp.ne.s32.totalorder %s1582_s20, 0 }
  0x4f   : > { %p1587_p8 = scmp.ne.s32.totalorder (!%p1586_p3), %s1581_s19, 0 }
  0x50   : > { %219 = sbr.rel (%p1586_p3) target bundleno = 654 (0x28e), region = 36 }
  0x57   : > { %1326 = dma.done.wait (%p1587_p8), [#allocation5], 1024  }
  0x58   : > { %1328 = vsyncadd (%p1587_p8), [#allocation5], 4294966272 }
  0x59   : > { %1330 = dma.done.wait (%p1587_p8), [#allocation8], 2048  }
  0x5a   : > { %1332 = vsyncadd (%p1587_p8), [#allocation8], 4294965248  ;;  %p246_p2 = scmp.eq.s32.totalorder %s1339_s15, 0 }
  0x5b   : > { %v1179_v0 = vld [vmem:[#allocation9] sm:$0xff] (%p246_p2)   ;;  %v1180_v1 = vld [vmem:[#allocation9 + $0x8] sm:$0xff] (%p246_p2)   ;;  %v1181_v2 = vld [vmem:[#allocation9 + $0x10] sm:$0xff] (%p246_p2)  }
  0x5c   : > { %254 = sbr.rel (!%p246_p2) target bundleno = 350 (0x15e), region = 52  ;;  %1017 = vmatprep.subr.bf16.mxu0 (%p246_p2), %v1179_v0  ;;  %1081 = vmatprep.subr.bf16.mxu1 (%p246_p2), %v1179_v0  ;;  %v1182_v3 = vld [vmem:[#allocation9 + $0x18] sm:$0xff] (%p246_p2)   ;;  %v1187_v4 = vld [vmem:[#allocation7] sm:$0xff] (%p246_p2)   ;;  %v1184_v7 = vld [vmem:[#allocation9 + $0x28] sm:$0xff] (%p246_p2)  }
  0x5d   : > { %1018 = vmatpush3.bf16.msra.mxu0 (%p246_p2), %v1179_v0  ;;  %1089 = vmatpush3.bf16.msra.mxu1 (%p246_p2), %v1179_v0  ;;  %v1188_v5 = vld [vmem:[#allocation7 + $0x20] sm:$0xff] (%p246_p2)   ;;  %v1185_v8 = vld [vmem:[#allocation9 + $0x30] sm:$0xff] (%p246_p2)   ;;  %v1186_v9 = vld [vmem:[#allocation9 + $0x38] sm:$0xff] (%p246_p2)  }
  0x5e   : > { %1019 = vmatprep.subr.bf16.mxu0 (%p246_p2), %v1180_v1  ;;  %1082 = vmatprep.subr.bf16.mxu1 (%p246_p2), %v1180_v1  ;;  %v1183_v6 = vld [vmem:[#allocation9 + $0x20] sm:$0xff] (%p246_p2)   ;;  %v1189_v10 = vld [vmem:[#allocation7 + $0x8] sm:$0xff] (%p246_p2)   ;;  %v1191_v12 = vld [vmem:[#allocation7 + $0x10] sm:$0xff] (%p246_p2)  }
  0x5f   : > { %1033 = vmatprep.mubr.bf16.mxu0 (%p246_p2), %v1187_v4  ;;  %1041 = vmatprep.mubr.bf16.mxu1 (%p246_p2), %v1188_v5  ;;  %v1190_v11 = vld [vmem:[#allocation7 + $0x28] sm:$0xff] (%p246_p2)   ;;  %v1192_v13 = vld [vmem:[#allocation7 + $0x30] sm:$0xff] (%p246_p2)   ;;  %v1193_v14 = vld [vmem:[#allocation7 + $0x18] sm:$0xff] (%p246_p2)  }
  0x60   : > { %v1194_v15 = vld [vmem:[#allocation7 + $0x38] sm:$0xff] (%p246_p2)  }
  0x61   : > { %1020 = vmatpush3.bf16.msra.mxu0 (%p246_p2), %v1180_v1  ;;  %1090 = vmatpush3.bf16.msra.mxu1 (%p246_p2), %v1180_v1 }
  0x62   : > { %1021 = vmatprep.subr.bf16.mxu0 (%p246_p2), %v1181_v2  ;;  %1083 = vmatprep.subr.bf16.mxu1 (%p246_p2), %v1181_v2 }
  0x65   : > { %1022 = vmatpush3.bf16.msra.mxu0 %v1181_v2  ;;  %1091 = vmatpush3.bf16.msra.mxu1 %v1181_v2 }
  0x66   : > { %1023 = vmatprep.subr.bf16.mxu0 %v1182_v3  ;;  %1084 = vmatprep.subr.bf16.mxu1 %v1182_v3 }
  0x69   : > { %1024 = vmatpush3.bf16.msra.mxu0 %v1182_v3  ;;  %1092 = vmatpush3.bf16.msra.mxu1 %v1182_v3 }
  0x6a   : > { %1025 = vmatprep.subr.bf16.mxu0 %v1183_v6  ;;  %1085 = vmatprep.subr.bf16.mxu1 %v1183_v6 }
  0x6d   : > { %1026 = vmatpush3.bf16.msra.mxu0 %v1183_v6  ;;  %1093 = vmatpush3.bf16.msra.mxu1 %v1183_v6 }
  0x6e   : > { %1027 = vmatprep.subr.bf16.mxu0 %v1184_v7  ;;  %1086 = vmatprep.subr.bf16.mxu1 %v1184_v7 }
  0x71   : > { %1028 = vmatpush3.bf16.msra.mxu0 %v1184_v7  ;;  %1094 = vmatpush3.bf16.msra.mxu1 %v1184_v7 }
  0x72   : > { %1029 = vmatprep.subr.bf16.mxu0 %v1185_v8  ;;  %1087 = vmatprep.subr.bf16.mxu1 %v1185_v8 }
  0x75   : > { %1030 = vmatpush3.bf16.msra.mxu0 %v1185_v8  ;;  %1095 = vmatpush3.bf16.msra.mxu1 %v1185_v8 }
  0x76   : > { %1031 = vmatprep.subr.bf16.mxu0 %v1186_v9  ;;  %1088 = vmatprep.subr.bf16.mxu1 %v1186_v9 }
  0x79   : > { %1032 = vmatpush3.bf16.msra.mxu0 %v1186_v9  ;;  %1096 = vmatpush3.bf16.msra.mxu1 %v1186_v9 }
  0x7c   : > { %1034 = vmatmul.mubr.bf16.vlgmr.msra.gmra.mrb[0].mxu0 %v1189_v10  ;;  %1042 = vmatmul.mubr.bf16.vlgmr.msra.gmra.mrb[0].mxu1 %v1190_v11 }
  0x7d   : > { %1037 = vmatprep.mubr.bf16.mxu0 %v1191_v12  ;;  %1045 = vmatprep.mubr.bf16.mxu1 %v1192_v13 }
  0x84   : > { %1038 = vmatmul.mubr.bf16.gmra.mrb[4].mxu0 %v1193_v14  ;;  %1046 = vmatmul.mubr.bf16.gmra.mrb[4].mxu1 %v1194_v15 }
 0x14f   : > { %v1035_v16 = vpop.f32.mrb[0].mxu0  ;;  %v1043_v17 = vpop.f32.mrb[0].mxu1 }
 0x150   : > { %v417_v18 = vpop.f32.mrb[1].mxu0  ;;  %v449_v19 = vpop.f32.mrb[1].mxu1 }
 0x151   : > { %v1036_v20 = vpop.f32.mrb[2].mxu0  ;;  %v1044_v21 = vpop.f32.mrb[2].mxu1 }
 0x152   : > { %v481_v22 = vpack.c.bf16 %v1036_v20, %v1035_v16  ;;  %v485_v23 = vpack.c.bf16 %v1044_v21, %v1043_v17  ;;  %v420_v24 = vpop.f32.mrb[3].mxu0  ;;  %v452_v25 = vpop.f32.mrb[3].mxu1 }
 0x153   : > { %v480_v26 = vpack.c.bf16 %v420_v24, %v417_v18  ;;  %v484_v27 = vpack.c.bf16 %v452_v25, %v449_v19 }
 0x154   : > { %489 = vst [vmem:[#allocation2 + $0x8] sm:$0xff] %v481_v22  ;;  %493 = vst [vmem:[#allocation2 + $0x28] sm:$0xff] %v485_v23 }
 0x155   : > { %488 = vst [vmem:[#allocation2] sm:$0xff] %v480_v26  ;;  %492 = vst [vmem:[#allocation2 + $0x20] sm:$0xff] %v484_v27 }
 0x157   : > { %v1039_v28 = vpop.f32.mrb[4].mxu0  ;;  %v1047_v29 = vpop.f32.mrb[4].mxu1 }
 0x158   : > { %v433_v30 = vpop.f32.mrb[5].mxu0  ;;  %v465_v31 = vpop.f32.mrb[5].mxu1 }
 0x159   : > { %v1040_v32 = vpop.f32.mrb[6].mxu0  ;;  %v1048_v33 = vpop.f32.mrb[6].mxu1 }
 0x15a   : > { %v483_v34 = vpack.c.bf16 %v1040_v32, %v1039_v28  ;;  %v487_v35 = vpack.c.bf16 %v1048_v33, %v1047_v29  ;;  %v436_v36 = vpop.f32.mrb[7].mxu0  ;;  %v468_v37 = vpop.f32.mrb[7].mxu1 }
 0x15b   : > { %v482_v38 = vpack.c.bf16 %v436_v36, %v433_v30  ;;  %v486_v39 = vpack.c.bf16 %v468_v37, %v465_v31 }
 0x15c   : > { %491 = vst [vmem:[#allocation2 + $0x18] sm:$0xff] %v483_v34  ;;  %495 = vst [vmem:[#allocation2 + $0x38] sm:$0xff] %v487_v35 }
 0x15d   : > { %490 = vst [vmem:[#allocation2 + $0x10] sm:$0xff] %v482_v38  ;;  %494 = vst [vmem:[#allocation2 + $0x30] sm:$0xff] %v486_v39 }
 0x15e PF: > { %p515_p5 = scmp.lt.s32.totalorder %s1339_s15, 0  ;;  %s516_s19 = ssub.s32 0, %s1339_s15  ;;  %v1195_v40 = vld [vmem:[#allocation4] sm:$0xff]   ;;  %v1197_v50 = vld [vmem:[#allocation4 + $0x8] sm:$0xff]   ;;  %v1199_v52 = vld [vmem:[#allocation4 + $0x10] sm:$0xff]  }
 0x15f   : > { %s961_s20 = smin.u32 %s1339_s15, %s516_s19  ;;  %v1196_v41 = vld [vmem:[#allocation4 + $0x20] sm:$0xff]   ;;  %1065 = vmatprep.mubr.bf16.mxu0 %v1195_v40  ;;  %v1198_v51 = vld [vmem:[#allocation4 + $0x28] sm:$0xff]   ;;  %v1200_v53 = vld [vmem:[#allocation4 + $0x30] sm:$0xff]   ;;  %s766_s22 = sadd.s32 1, %s1339_s15 }
 0x160   : > { %s518_s23 = sand.u32 1, %s961_s20   ;;  %1073 = vmatprep.mubr.bf16.mxu1 %v1196_v41  ;;  %v1201_v54 = vld [vmem:[#allocation4 + $0x18] sm:$0xff]   ;;  %p972_p10 = scmp.ge.s32.totalorder %s766_s22, 2 }
 0x161   : > { %s519_s7 = ssub.s32 0, %s518_s23  ;;  %v1202_v55 = vld [vmem:[#allocation4 + $0x38] sm:$0xff]  }
 0x162   : > { %s1594_s7 = smov (!%p515_p5, %s519_s7), %s518_s23 }
 0x163   : > { %s983_s11 = sshll.u32 %s1594_s7, 6  ;;  %s779_s25 = ssub.s32 (!%p972_p10), 1, %s1594_s7 }
 0x164   : > { %s1520_s12 = scalar_lea.vmem [#allocation2], %s983_s11  ;;  %s984_s8 = sshll.u32 (!%p972_p10), %s779_s25, 6 }
 0x165   : > { %v529_v42 = vld [vmem:[%s1520_s12] sm:$0xff]  ;;  %v530_v43 = vld [vmem:[%s1520_s12 + $0x8] sm:$0xff]  ;;  %v531_v44 = vld [vmem:[%s1520_s12 + $0x10] sm:$0xff]  ;;  %s782_s9 = scalar_lea.vmem (!%p972_p10), [#allocation2], %s984_s8 }
 0x166   : > { %1049 = vmatprep.subr.bf16.mxu0 %v529_v42  ;;  %1097 = vmatprep.subr.bf16.mxu1 %v529_v42  ;;  %v532_v45 = vld [vmem:[%s1520_s12 + $0x18] sm:$0xff]  ;;  %v533_v46 = vld [vmem:[%s1520_s12 + $0x20] sm:$0xff]  ;;  %v534_v47 = vld [vmem:[%s1520_s12 + $0x28] sm:$0xff] }
 0x167   : > { %1050 = vmatpush3.bf16.msra.mxu0 %v529_v42  ;;  %1105 = vmatpush3.bf16.msra.mxu1 %v529_v42  ;;  %v535_v48 = vld [vmem:[%s1520_s12 + $0x30] sm:$0xff]  ;;  %v536_v49 = vld [vmem:[%s1520_s12 + $0x38] sm:$0xff] }
 0x168   : > { %1051 = vmatprep.subr.bf16.mxu0 %v530_v43  ;;  %1098 = vmatprep.subr.bf16.mxu1 %v530_v43 }
 0x16b   : > { %1052 = vmatpush3.bf16.msra.mxu0 %v530_v43  ;;  %1106 = vmatpush3.bf16.msra.mxu1 %v530_v43 }
 0x16c   : > { %1053 = vmatprep.subr.bf16.mxu0 %v531_v44  ;;  %1099 = vmatprep.subr.bf16.mxu1 %v531_v44 }
 0x16f   : > { %1054 = vmatpush3.bf16.msra.mxu0 %v531_v44  ;;  %1107 = vmatpush3.bf16.msra.mxu1 %v531_v44 }
 0x170   : > { %1055 = vmatprep.subr.bf16.mxu0 %v532_v45  ;;  %1100 = vmatprep.subr.bf16.mxu1 %v532_v45 }
 0x173   : > { %1056 = vmatpush3.bf16.msra.mxu0 %v532_v45  ;;  %1108 = vmatpush3.bf16.msra.mxu1 %v532_v45 }
 0x174   : > { %1057 = vmatprep.subr.bf16.mxu0 %v533_v46  ;;  %1101 = vmatprep.subr.bf16.mxu1 %v533_v46 }
 0x177   : > { %1058 = vmatpush3.bf16.msra.mxu0 %v533_v46  ;;  %1109 = vmatpush3.bf16.msra.mxu1 %v533_v46 }
 0x178   : > { %1059 = vmatprep.subr.bf16.mxu0 %v534_v47  ;;  %1102 = vmatprep.subr.bf16.mxu1 %v534_v47 }
 0x17b   : > { %1060 = vmatpush3.bf16.msra.mxu0 %v534_v47  ;;  %1110 = vmatpush3.bf16.msra.mxu1 %v534_v47 }
 0x17c   : > { %1061 = vmatprep.subr.bf16.mxu0 %v535_v48  ;;  %1103 = vmatprep.subr.bf16.mxu1 %v535_v48 }
 0x17f   : > { %1062 = vmatpush3.bf16.msra.mxu0 %v535_v48  ;;  %1111 = vmatpush3.bf16.msra.mxu1 %v535_v48 }
 0x180   : > { %1063 = vmatprep.subr.bf16.mxu0 %v536_v49  ;;  %1104 = vmatprep.subr.bf16.mxu1 %v536_v49 }
 0x183   : > { %1064 = vmatpush3.bf16.msra.mxu0 %v536_v49  ;;  %1112 = vmatpush3.bf16.msra.mxu1 %v536_v49 }
 0x186   : > { %1066 = vmatmul.mubr.bf16.vlgmr.msra.gmra.mrb[0].mxu0 %v1197_v50  ;;  %1074 = vmatmul.mubr.bf16.vlgmr.msra.gmra.mrb[0].mxu1 %v1198_v51 }
 0x187   : > { %1069 = vmatprep.mubr.bf16.mxu0 %v1199_v52  ;;  %1077 = vmatprep.mubr.bf16.mxu1 %v1200_v53 }
 0x18e   : > { %1070 = vmatmul.mubr.bf16.gmra.mrb[4].mxu0 %v1201_v54  ;;  %1078 = vmatmul.mubr.bf16.gmra.mrb[4].mxu1 %v1202_v55 }
 0x259   : > { %v1067_v56 = vpop.f32.mrb[0].mxu0  ;;  %v1075_v57 = vpop.f32.mrb[0].mxu1 }
 0x25a   : > { %v651_v58 = vpop.f32.mrb[1].mxu0  ;;  %v683_v59 = vpop.f32.mrb[1].mxu1 }
 0x25b   : > { %v1068_v60 = vpop.f32.mrb[2].mxu0  ;;  %v1076_v61 = vpop.f32.mrb[2].mxu1 }
 0x25c   : > { %v654_v62 = vpop.f32.mrb[3].mxu0  ;;  %v686_v63 = vpop.f32.mrb[3].mxu1  ;;  %v772_v9 = vpack.c.bf16 (!%p972_p10), %v1068_v60, %v1067_v56  ;;  %v776_v13 = vpack.c.bf16 (!%p972_p10), %v1076_v61, %v1075_v57 }
 0x25d   : > { %v771_v8 = vpack.c.bf16 (!%p972_p10), %v654_v62, %v651_v58  ;;  %v775_v12 = vpack.c.bf16 (!%p972_p10), %v686_v63, %v683_v59 }
 0x25e   : > { %770 = sbr.rel (%p972_p10) target bundleno = 616 (0x268), region = 64  ;;  %788 = vst [vmem:[%s782_s9 + $0x8] sm:$0xff] (!%p972_p10), %v772_v9  ;;  %792 = vst [vmem:[%s782_s9 + $0x28] sm:$0xff] (!%p972_p10), %v776_v13 }
 0x25f   : > { %787 = vst [vmem:[%s782_s9] sm:$0xff] (!%p972_p10), %v771_v8  ;;  %791 = vst [vmem:[%s782_s9 + $0x20] sm:$0xff] (!%p972_p10), %v775_v12 }
 0x261   : > { %v1071_v0 = vpop.f32.mrb[4].mxu0  ;;  %v1079_v1 = vpop.f32.mrb[4].mxu1 }
 0x262   : > { %v667_v2 = vpop.f32.mrb[5].mxu0  ;;  %v699_v3 = vpop.f32.mrb[5].mxu1 }
 0x263   : > { %v1072_v4 = vpop.f32.mrb[6].mxu0  ;;  %v1080_v5 = vpop.f32.mrb[6].mxu1 }
 0x264   : > { %v670_v6 = vpop.f32.mrb[7].mxu0  ;;  %v702_v7 = vpop.f32.mrb[7].mxu1  ;;  %v774_v11 = vpack.c.bf16 (!%p972_p10), %v1072_v4, %v1071_v0  ;;  %v778_v15 = vpack.c.bf16 (!%p972_p10), %v1080_v5, %v1079_v1 }
 0x265   : > { %v773_v10 = vpack.c.bf16 %v670_v6, %v667_v2  ;;  %v777_v14 = vpack.c.bf16 %v702_v7, %v699_v3 }
 0x266   : > { %790 = vst [vmem:[%s782_s9 + $0x18] sm:$0xff] %v774_v11  ;;  %794 = vst [vmem:[%s782_s9 + $0x38] sm:$0xff] %v778_v15 }
 0x267   : > { %789 = vst [vmem:[%s782_s9 + $0x10] sm:$0xff] %v773_v10  ;;  %793 = vst [vmem:[%s782_s9 + $0x30] sm:$0xff] %v777_v14 }
 0x268 PF: > { %p975_p11 = scmp.ne.s32.totalorder %s1339_s15, 1 }
 0x269   : > { %v976_v16 = vld [vmem:[%s1576_s3] ss:$0 sm:$0xff] (!%p975_p11) }
 0x26a   : > { %798 = sbr.rel (%p975_p11) target bundleno = 628 (0x274), region = 68  ;;  %v806_v17 = vadd.f32 (!%p975_p11), %v976_v16, %v651_v58  ;;  %v807_v18 = vadd.f32 (!%p975_p11), %v976_v16, %v654_v62  ;;  %v808_v19 = vadd.f32 (!%p975_p11), %v1067_v56, %v976_v16  ;;  %v809_v20 = vadd.f32 (!%p975_p11), %v1068_v60, %v976_v16 }
 0x26b   : > { %v810_v21 = vadd.f32 (!%p975_p11), %v976_v16, %v667_v2  ;;  %v811_v22 = vadd.f32 (!%p975_p11), %v976_v16, %v670_v6  ;;  %v812_v23 = vadd.f32 (!%p975_p11), %v1071_v0, %v976_v16  ;;  %v813_v24 = vadd.f32 (!%p975_p11), %v1072_v4, %v976_v16 }
 0x26c   : > { %822 = vst [vmem:[#allocation10] sm:$0xff] (!%p975_p11), %v806_v17  ;;  %823 = vst [vmem:[#allocation10 + $0x8] sm:$0xff] (!%p975_p11), %v807_v18  ;;  %v814_v25 = vadd.f32 (!%p975_p11), %v976_v16, %v683_v59  ;;  %v815_v26 = vadd.f32 (!%p975_p11), %v976_v16, %v686_v63  ;;  %v816_v27 = vadd.f32 (!%p975_p11), %v1075_v57, %v976_v16 }
 0x26d   : > { %824 = vst [vmem:[#allocation10 + $0x10] sm:$0xff] (!%p975_p11), %v808_v19  ;;  %825 = vst [vmem:[#allocation10 + $0x18] sm:$0xff] (!%p975_p11), %v809_v20  ;;  %v817_v28 = vadd.f32 (!%p975_p11), %v1076_v61, %v976_v16  ;;  %v818_v29 = vadd.f32 (!%p975_p11), %v976_v16, %v699_v3  ;;  %v819_v30 = vadd.f32 (!%p975_p11), %v976_v16, %v702_v7 }
 0x26e   : > { %826 = vst [vmem:[#allocation10 + $0x20] sm:$0xff] (!%p975_p11), %v810_v21  ;;  %827 = vst [vmem:[#allocation10 + $0x28] sm:$0xff] (!%p975_p11), %v811_v22  ;;  %v820_v31 = vadd.f32 (!%p975_p11), %v1079_v1, %v976_v16  ;;  %v821_v32 = vadd.f32 (!%p975_p11), %v1080_v5, %v976_v16 }
 0x26f   : > { %828 = vst [vmem:[#allocation10 + $0x30] sm:$0xff] (!%p975_p11), %v812_v23  ;;  %829 = vst [vmem:[#allocation10 + $0x38] sm:$0xff] (!%p975_p11), %v813_v24 }
 0x270   : > { %830 = vst [vmem:[#allocation10 + $0x40] sm:$0xff] (!%p975_p11), %v814_v25  ;;  %831 = vst [vmem:[#allocation10 + $0x48] sm:$0xff] (!%p975_p11), %v815_v26 }
 0x271   : > { %832 = vst [vmem:[#allocation10 + $0x50] sm:$0xff] %v816_v27  ;;  %833 = vst [vmem:[#allocation10 + $0x58] sm:$0xff] %v817_v28 }
 0x272   : > { %834 = vst [vmem:[#allocation10 + $0x60] sm:$0xff] %v818_v29  ;;  %835 = vst [vmem:[#allocation10 + $0x68] sm:$0xff] %v819_v30 }
 0x273   : > { %836 = vst [vmem:[#allocation10 + $0x70] sm:$0xff] %v820_v31  ;;  %837 = vst [vmem:[#allocation10 + $0x78] sm:$0xff] %v821_v32 }
 0x274 PF: > { %p1538_p12 = scmp.eq.s32.totalorder %s934_s18, 1  ;;  %s1354_s14 = smov [#allocation10]  }
 0x275   : > { %s847_s21 = sshll.u32 %s1354_s14, 4  ;;  %s848_s21 = int_to_ptr.vmem [resolvable:$true] %s847_s21 }
 0x276   : > { %s1287_s26 = scalar_lea.vmem %s848_s21, 2048  ;;  %p1294_p1 = scmp.lt.s32.totalorder %s848_s21, %s848_s21 }
 0x277   : > { %p1288_p13 = scmp.ne.s32.totalorder %s848_s21, %s1287_s26  ;;  %p1295_p4 = scmp.lt.s32.totalorder %s1287_s26, %s1287_s26 }
 0x279   : > { %p1289_p6 = pnand %p1288_p13, %p1538_p12  ;;  %p1296_p7 = por %p1295_p4, %p1294_p1 }
 0x27b   : > { %p1290_p0 = pneg %p1289_p6 }
 0x27d   : > { %p1297_p9 = pnand %p1296_p7, %p1290_p0 }
 0x27f   : > { %1300 = shalt.err (!%p1297_p9)
}
 0x280   : > { %s1301_s18 = scalar_lea.hbm %s1577_s4, 2048 }
 0x281   : > { %p1302_p3 = scmp.ne.s32.totalorder %s1577_s4, %s1301_s18  ;;  %p1307_p5 = scmp.lt.u32.totalorder %s1301_s18, %s1577_s4 }
 0x283   : > { %p1303_p8 = pnand %p1302_p3, %p1538_p12 }
 0x285   : > { %p1304_p2 = pneg %p1303_p8 }
 0x287   : > { %p1309_p10 = pnand %p1307_p5, %p1304_p2 }
 0x289   : > { %1312 = shalt.err (!%p1309_p10)
}
 0x28a   : > { %s1355_s19 = smov 128   ;;  %s1356_s20 = smov 8  }
 0x28b   : > { %1126 = dma.vmem_to_hbm [thread:$0]  (%p1538_p12), %s848_s21, 2048, %s1577_s4, [#allocation6], %s1355_s19, %s1355_s19, %s1356_s20  }
 0x28c   : > { %1334 = dma.done.wait (%p1538_p12), [#allocation6], 2048  }
 0x28d   : > { %1336 = vsyncadd (%p1538_p12), [#allocation6], 4294965248 }
 0x28e PF: > { %s17_s17 = sadd.s32 1, %s1347_s17   ;;  %s1589_s15 = smov %s1343_s16 }
 0x28f   : > { %p14_p11 = scmp.ge.s32.totalorder %s17_s17, 4   ;;  %s1590_s16 = smov %s1592_s24 }
 0x291   :  { %16 = sbr.rel (!%p14_p11) target bundleno = 4 (0x4), region = 99 }
 0x298   :  { %863 = vsyncpa [#allocation5], 1 }
 0x299   :  { %865 = vsyncpa [#allocation5 + $0x1], 1 }
 0x29a   :  { %866 = vsyncpa [#allocation8], 1 }
 0x29b   :  { %867 = vsyncpa [#allocation6], 1 }
 0x29c   :  { %869 = vsyncpa [#allocation6 + $0x1], 1 }

</bundles_post_ra>
